<compile_context>
chip_gen: v6e
topology: v6e:2x2x1
jax: 0.10.0
libtpu: 0.0.40
codegen_flags: <defaults>
</compile_context>

<pallas_src>
import functools
import math

import jax
import jax.numpy as jnp
from jax.experimental import pallas as pl
from jax.experimental.pallas import tpu as pltpu


def _round_up(x, m):
    return (x + m - 1) // m * m


# ---------------------------------------------------------------------------
# Fused kernel: grid = (batch_tiles, num_layers)
# ---------------------------------------------------------------------------
def _nac_stack_kernel(x_ref, w_ref, o_ref, act_ref):
    """One grid step = one layer applied to one batch tile.

    x_ref  : (Bt, D)  padded input tile (only consumed at layer 0)
    w_ref  : (D, D)   pre-gated, pre-transposed, zero-padded weight of layer l
    o_ref  : (Bt, D)  padded output tile (only meaningful after the last layer)
    act_ref: (Bt, D)  f32 VMEM scratch -- activation carried across layers
    """
    l = pl.program_id(1)

    @pl.when(l == 0)
    def _():
        act_ref[...] = x_ref[...].astype(jnp.float32)

    # out = act @ W^T, done as act @ W_t with W_t pre-transposed to (in, out).
    act_ref[...] = jnp.dot(
        act_ref[...], w_ref[...], preferred_element_type=jnp.float32
    )

    @pl.when(l == pl.num_programs(1) - 1)
    def _():
        o_ref[...] = act_ref[...].astype(o_ref.dtype)


# ---------------------------------------------------------------------------
# One-time weight preparation (outside the hot path)
# ---------------------------------------------------------------------------
def prepare_nac_weights(params):
    """Gate (tanh*sigmoid), transpose to (in, out) and zero-pad to a common
    lane-dense (D_pad, D_pad) square; stack into (L, D_pad, D_pad).

    Zero padding keeps the math exact: padded input lanes are zero and padded
    weight rows/cols are zero, so padded lanes stay zero through every layer.
    """
    dims = [params[0][0].shape[1]] + [w_hat.shape[0] for w_hat, _ in params]
    d_pad = _round_up(max(dims), 128)
    blocks = []
    for w_hat, m_hat in params:
        out_dim, in_dim = w_hat.shape
        w = jnp.tanh(w_hat) * jax.nn.sigmoid(m_hat)          # (out, in)
        w_t = (
            jnp.zeros((d_pad, d_pad), jnp.float32)
            .at[:in_dim, :out_dim]
            .set(w.T.astype(jnp.float32))
        )
        blocks.append(w_t)
    return jnp.stack(blocks, axis=0)                          # (L, D_pad, D_pad)


# ---------------------------------------------------------------------------
# Forward wrapper
# ---------------------------------------------------------------------------
@functools.partial(jax.jit, static_argnames=("out_dim",))
def nac_forward_fused(x, w_stack, out_dim):
    batch, in_dim = x.shape
    num_layers, d_pad, _ = w_stack.shape

    # Pad batch to a sublane multiple (8 for f32).  For large batches use a
    # 512-row tile: big tiles amortize per-step overhead and the per-tile
    # re-fetch of the L weight matrices, while 512 * d_pad f32 stays well
    # within the VMEM scratch budget for typical NAC widths.
    if batch <= 512:
        batch_pad = _round_up(batch, 8)
        batch_tile = batch_pad
    else:
        batch_tile = 512
        batch_pad = _round_up(batch, batch_tile)

    x_p = (
        jnp.zeros((batch_pad, d_pad), x.dtype)
        .at[:batch, :in_dim]
        .set(x)
    )

    flops = 2 * batch_pad * d_pad * d_pad * num_layers
    bytes_accessed = (
        x_p.size * x_p.dtype.itemsize
        + w_stack.size * w_stack.dtype.itemsize
        + batch_pad * d_pad * x.dtype.itemsize
    )

    out_padded = pl.pallas_call(
        _nac_stack_kernel,
        out_shape=jax.ShapeDtypeStruct((batch_pad, d_pad), x.dtype),
        grid_spec=pltpu.PrefetchScalarGridSpec(
            num_scalar_prefetch=0,
            grid=(batch_pad // batch_tile, num_layers),
            in_specs=[
                # Same block across the layer axis -> fetched once per tile.
                pl.BlockSpec((batch_tile, d_pad), lambda b, l: (b, 0)),
                # Leading layer dim squeezed out -> kernel sees (D, D).
                pl.BlockSpec((None, d_pad, d_pad), lambda b, l: (l, 0, 0)),
            ],
            out_specs=pl.BlockSpec((batch_tile, d_pad), lambda b, l: (b, 0)),
            scratch_shapes=[pltpu.VMEM((batch_tile, d_pad), jnp.float32)],
        ),
        compiler_params=pltpu.CompilerParams(
            dimension_semantics=("parallel", "arbitrary"),
        ),
        cost_estimate=pl.CostEstimate(
            flops=flops, transcendentals=0, bytes_accessed=bytes_accessed
        ),
    )(x_p, w_stack)

    return out_padded[:batch, :out_dim]


# ---------------------------------------------------------------------------
# Parameter init (matches kaiming_uniform_(a=sqrt(5)))
# ---------------------------------------------------------------------------
def init_nac_params(key, num_layers, in_dim, hidden_dim, out_dim):
    params = []
    for i in range(num_layers):
        layer_in = hidden_dim if i > 0 else in_dim
        layer_out = hidden_dim if i < num_layers - 1 else out_dim
        # kaiming_uniform with a=sqrt(5): bound = sqrt(6/((1+a^2)*fan_in)) = 1/sqrt(fan_in)
        bound = 1.0 / math.sqrt(layer_in)
        key, kw, km = jax.random.split(key, 3)
        w_hat = jax.random.uniform(
            kw, (layer_out, layer_in), jnp.float32, -bound, bound
        )
        m_hat = jax.random.uniform(
            km, (layer_out, layer_in), jnp.float32, -bound, bound
        )
        params.append((w_hat, m_hat))
    return params


def nac_forward_ref(x, params):
    """Pure-JAX reference."""
    out = x
    for w_hat, m_hat in params:
        w = jnp.tanh(w_hat) * jax.nn.sigmoid(m_hat)
        out = out @ w.T
    return out


if __name__ == "__main__":
    num_layers = 3
    in_dim = 16
    hidden_dim = 32
    out_dim = 8
    batch = 4

    key = jax.random.PRNGKey(0)
    key, kx = jax.random.split(key)
    x = jax.random.normal(kx, (batch, in_dim), jnp.float32)

    params = init_nac_params(key, num_layers, in_dim, hidden_dim, out_dim)

    # Gate + transpose + pad once, outside the per-forward hot path.
    w_stack = jax.block_until_ready(prepare_nac_weights(params))

    y = nac_forward_fused(x, w_stack, out_dim)
    y = jax.block_until_ready(y)

    y_ref = nac_forward_ref(x, params)
    assert y.shape == (batch, out_dim)
    assert jnp.allclose(y, y_ref, atol=1e-5, rtol=1e-5)

    print("KERNEL_OK")
</pallas_src>

<mosaic_0001>
module attributes {stable_mosaic.version = 11 : i64} {
  func.func @_nac_stack_kernel(%arg0: i32, %arg1: i32, %arg2: memref<8x128xf32, #tpu.memory_space<vmem>>, %arg3: memref<1x128x128xf32, #tpu.memory_space<vmem>>, %arg4: memref<8x128xf32, #tpu.memory_space<vmem>>, %arg5: memref<8x128xf32, #tpu.memory_space<vmem>>) attributes {dimension_semantics = [#tpu.dimension_semantics<parallel>, #tpu.dimension_semantics<arbitrary>], iteration_bounds = array<i64: 1, 3>, scalar_prefetch = 0 : i64, scratch_operands = 1 : i64, tpu.core_type = #tpu.core_type<tc>, window_params = [{transform_indices = @transform_0, window_bounds = array<i64: 8, 128>}, {transform_indices = @transform_1, window_bounds = array<i64: 1, 128, 128>}, {transform_indices = @transform_2, window_bounds = array<i64: 8, 128>}]} {
    %c0_i32 = arith.constant 0 : i32
    %0 = arith.cmpi eq, %arg1, %c0_i32 : i32
    %1 = arith.extui %0 : i1 to i32
    %c0_i32_0 = arith.constant 0 : i32
    %2 = arith.cmpi ne, %1, %c0_i32_0 : i32
    scf.if %2 {
      %c0_8 = arith.constant 0 : index
      %c0_9 = arith.constant 0 : index
      %11 = vector.load %arg2[%c0_8, %c0_9] : memref<8x128xf32, #tpu.memory_space<vmem>>, vector<8x128xf32>
      %c0_10 = arith.constant 0 : index
      %c0_11 = arith.constant 0 : index
      %12 = vector.load %arg5[%c0_10, %c0_11] : memref<8x128xf32, #tpu.memory_space<vmem>>, vector<8x128xf32>
      tpu.vector_store %arg5[%c0_10, %c0_11], %11 {strides = array<i32>} : memref<8x128xf32, #tpu.memory_space<vmem>>, vector<8x128xf32>,
    } else {
    }
    %c0 = arith.constant 0 : index
    %c0_1 = arith.constant 0 : index
    %3 = vector.load %arg5[%c0, %c0_1] : memref<8x128xf32, #tpu.memory_space<vmem>>, vector<8x128xf32>
    %c0_2 = arith.constant 0 : index
    %c0_3 = arith.constant 0 : index
    %c0_4 = arith.constant 0 : index
    %4 = vector.load %arg3[%c0_2, %c0_3, %c0_4] : memref<1x128x128xf32, #tpu.memory_space<vmem>>, vector<1x128x128xf32>
    %5 = vector.shape_cast %4 : vector<1x128x128xf32> to vector<128x128xf32>
    %cst = arith.constant dense<0.000000e+00> : vector<8x128xf32>
    %6 = tpu.matmul %3, %5, %cst {dimension_numbers = #tpu.dot_dimension_numbers<[1], [0], [0], [1], [0, 0, 1, 1], [], []>} : vector<8x128xf32>, vector<128x128xf32>, vector<8x128xf32> -> vector<8x128xf32>
    %c0_5 = arith.constant 0 : index
    %c0_6 = arith.constant 0 : index
    %7 = vector.load %arg5[%c0_5, %c0_6] : memref<8x128xf32, #tpu.memory_space<vmem>>, vector<8x128xf32>
    tpu.vector_store %arg5[%c0_5, %c0_6], %6 {strides = array<i32>} : memref<8x128xf32, #tpu.memory_space<vmem>>, vector<8x128xf32>,
    %c2_i32 = arith.constant 2 : i32
    %8 = arith.cmpi eq, %arg1, %c2_i32 : i32
    %9 = arith.extui %8 : i1 to i32
    %c0_i32_7 = arith.constant 0 : i32
    %10 = arith.cmpi ne, %9, %c0_i32_7 : i32
    scf.if %10 {
      %c0_8 = arith.constant 0 : index
      %c0_9 = arith.constant 0 : index
      %11 = vector.load %arg5[%c0_8, %c0_9] : memref<8x128xf32, #tpu.memory_space<vmem>>, vector<8x128xf32>
      %c0_10 = arith.constant 0 : index
      %c0_11 = arith.constant 0 : index
      %12 = vector.load %arg4[%c0_10, %c0_11] : memref<8x128xf32, #tpu.memory_space<vmem>>, vector<8x128xf32>
      tpu.vector_store %arg4[%c0_10, %c0_11], %11 {strides = array<i32>} : memref<8x128xf32, #tpu.memory_space<vmem>>, vector<8x128xf32>,
    } else {
    }
    return
  }
  func.func @transform_0(%arg0: i32, %arg1: i32) -> (i32, i32) {
    %c0_i32 = arith.constant 0 : i32
    %c0_i32_0 = arith.constant 0 : i32
    return %arg0, %c0_i32 : i32, i32
  }
  func.func @transform_1(%arg0: i32, %arg1: i32) -> (i32, i32, i32) {
    %c0_i32 = arith.constant 0 : i32
    %c0_i32_0 = arith.constant 0 : i32
    %c0_i32_1 = arith.constant 0 : i32
    return %arg1, %c0_i32, %c0_i32_0 : i32, i32, i32
  }
  func.func @transform_2(%arg0: i32, %arg1: i32) -> (i32, i32) {
    %c0_i32 = arith.constant 0 : i32
    %c0_i32_0 = arith.constant 0 : i32
    return %arg0, %c0_i32 : i32, i32
  }
}

</mosaic_0001>

<bundles_post_ra>
// kernel: nac_forward_fused.1
= control target key start
LH: loop header
LB: loop body
LE: loop exit
PB: predicated region body
PF: predicated region fallthrough
CT: control target
= control target key end

     0   :  { %7 = vsyncpa [#allocation4], 0  ;;  %s719_s0 = inlined_call_operand.vmem [shape: f32[8,128], index: 0, kind: input, shape index: {}]   ;;  %s720_s1 = inlined_call_operand.hbm [shape: f32[3,128,128], index: 1, kind: input, shape index: {}]   ;;  %s721_s2 = inlined_call_operand.vmem [shape: f32[8,128], index: 2, kind: output, shape index: {}]  }
   0x1   :  { %9 = vsyncpa [#allocation4 + $0x1], 0  ;;  %s602_s9 = smov 0   ;;  %s604_s10 = smov 0  }
   0x2   :  { %s606_s11 = smov 0   ;;  %s608_s12 = smov 0  }
   0x3   :  { %s610_s13 = smov 0   ;;  %s612_s14 = smov 0  }
   0x4 LB: > { %s376_s15 = sadd.s32 4294967295, %s580_s14   ;;  %s24_s16 = sadd.s32 1, %s576_s13  ;;  %s580_s14 = sphi %s612_s14, %s15_s14   ;;  %s576_s13 = sphi %s610_s13, %s729_s13   ;;  %s572_s12 = sphi %s608_s12, %s728_s12   ;;  %s568_s11 = sphi %s606_s11, %s727_s11   ;;  %s564_s10 = sphi %s604_s10, %s726_s10   ;;  %s560_s9 = sphi %s602_s9, %s725_s9  }
   0x5   : > { %p25_p0 = scmp.ge.s32.totalorder %s24_s16, 3  ;;  %s60_s17 = sadd.s32 1, %s568_s11 }
   0x6   : > { %p67_p1 = scmp.ne.s32.totalorder %s568_s11, %s564_s10  ;;  %p68_p2 = scmp.eq.s32.totalorder %s580_s14, 0 }
   0x7   : > { %s731_s16 = smov (%p25_p0, %s24_s16), 0  ;;  %p73_p4 = scmp.ne.s32.totalorder %s564_s10, %s560_s9 }
   0x8   : > { %p638_p3 = por %p68_p2, %p67_p1  ;;  %s57_s19 = ssub.s32 %s576_s13, %s731_s16 }
   0x9   : > { %p74_p5 = scmp.eq.s32.totalorder %s376_s15, 0  ;;  %p58_p6 = scmp.eq.s32.totalorder %s57_s19, 0 }
   0xa   : > { %p449_p8 = scmp.lt.s32.totalorder %s580_s14, 3  ;;  %s130_s22 = sand.u32 1, %s568_s11  }
   0xb   : > { %p645_p7 = por %p74_p5, %p73_p4  ;;  %s390_s23 = sshll.u32 %s576_s13, 11 }
   0xc   : > { %s651_s21 = scalar_select %p58_p6, %s568_s11, %s60_s17  }
   0xd   : > { %s380_s24 = sshll.u32 %s130_s22, 7  ;;  %s140_s27 = scalar_lea.hbm %s720_s1, %s390_s23 }
   0xe   : > { %s134_s28 = scalar_lea.vmem [#allocation3], %s380_s24  ;;  %p660_p9 = pnand %p449_p8, %p638_p3 }
   0xf   : > { %s141_s29 = sshll.u32 %s134_s28, 4  ;;  %s131_s3 = scalar_lea.sflag [#allocation4], %s130_s22  ;;  %s142_s29 = int_to_ptr.vmem [resolvable:$true] %s141_s29 }
  0x10   : > { %p504_p10 = pneg %p660_p9  ;;  %s515_s4 = scalar_lea.vmem %s142_s29, 2048 }
  0x11   : > { %p516_p11 = scmp.ne.s32.totalorder %s142_s29, %s515_s4  ;;  %s582_s5 = smov [#allocation3]  }
  0x12   : > { %s520_s6 = sshll.u32 %s582_s5, 4  ;;  %s521_s6 = int_to_ptr.vmem [resolvable:$false] %s520_s6 }
  0x13   : > { %p518_p12 = pnand %p516_p11, %p504_p10  ;;  %s522_s7 = scalar_lea.vmem %s521_s6, 4096 }
  0x14   : > { %p523_p0 = scmp.lt.s32.totalorder %s142_s29, %s521_s6  ;;  %p524_p1 = scmp.lt.s32.totalorder %s522_s7, %s515_s4 }
  0x15   : > { %p519_p13 = pneg %p518_p12 }
  0x16   : > { %p525_p2 = por %p524_p1, %p523_p0 }
  0x18   : > { %p526_p3 = pnand %p525_p2, %p519_p13 }
  0x1a   : > { %529 = shalt.err (!%p526_p3)
}
  0x1b   : > { %s583_s8 = smov 128   ;;  %s584_s9 = smov 8  }
  0x1c   : > { %448 = dma.hbm_to_vmem [thread:$0]  (!%p660_p9), %s140_s27, 2048, %s142_s29, %s131_s3, %s583_s8, %s583_s8, %s584_s9  }
  0x1d   : > { %p383_p4 = scmp.ge.s32.totalorder %s580_s14, 1  ;;  %p149_p5 = scmp.lt.s32.totalorder %s580_s14, 4 }
  0x1f   : > { %p150_p6 = pnand %p383_p4, %p149_p5 }
  0x20   : > { %s155_s15 = sand.u32 (!%p150_p6), 1, %s564_s10  }
  0x21   : > { %153 = sbr.rel (%p150_p6) target bundleno = 283 (0x11b), region = 28  ;;  %s384_s17 = sshll.u32 (!%p150_p6), %s155_s15, 7 }
  0x22   : > { %s156_s18 = scalar_lea.sflag (!%p150_p6), [#allocation4], %s155_s15  ;;  %s671_s19 = scalar_lea.vmem (!%p150_p6), [#allocation3], %s384_s17 }
  0x26   : > { %555 = dma.done.wait (%p645_p7), %s156_s18, 2048  }
  0x27   : > { %557 = vsyncadd (%p645_p7), %s156_s18, 4294965248  ;;  %p385_p8 = scmp.ne.s32.totalorder %s572_s12, 0 }
  0x29   : > { %194 = sbr.rel (%p385_p8) target bundleno = 48 (0x30), region = 36 }
  0x2e   : > { %v195_v0 = vld [vmem:[%s719_s0] sm:$0xff] }
  0x2f   : > { %196 = vst [vmem:[#allocation2] sm:$0xff] %v195_v0 }
  0x30 PF: > { %v213_v1 = vld [vmem:[%s671_s19 + $0x78] sm:$0xff]  ;;  %v585_v2 = vmov 0.0   ;;  %v212_v3 = vld [vmem:[%s671_s19 + $0x70] sm:$0xff]  ;;  %vm586_vm0 = vmmov 0   ;;  %v211_v4 = vld [vmem:[%s671_s19 + $0x68] sm:$0xff]  ;;  %p386_p7 = scmp.ne.s32.totalorder %s572_s12, 2 }
  0x31   : > { %408 = vmatprep.subr.mxu0 %v585_v2  ;;  %440 = vmatprep.mubr.msk.f32.mxu0 %vm586_vm0, %v585_v2  ;;  %v210_v5 = vld [vmem:[%s671_s19 + $0x60] sm:$0xff]  ;;  %v209_v6 = vld [vmem:[%s671_s19 + $0x58] sm:$0xff]  ;;  %v208_v7 = vld [vmem:[%s671_s19 + $0x50] sm:$0xff] }
  0x32   : > { %409 = vmatpush3.msra.mxu0 %v213_v1  ;;  %v207_v8 = vld [vmem:[%s671_s19 + $0x48] sm:$0xff]  ;;  %v206_v9 = vld [vmem:[%s671_s19 + $0x40] sm:$0xff]  ;;  %v205_v10 = vld [vmem:[%s671_s19 + $0x38] sm:$0xff] }
  0x33   : > { %410 = vmatprep.subr.mxu0 %v585_v2  ;;  %v204_v11 = vld [vmem:[%s671_s19 + $0x30] sm:$0xff]  ;;  %v203_v12 = vld [vmem:[%s671_s19 + $0x28] sm:$0xff]  ;;  %v202_v13 = vld [vmem:[%s671_s19 + $0x20] sm:$0xff] }
  0x34   : > { %411 = vmatpush3.msra.mxu0 %v212_v3  ;;  %v201_v14 = vld [vmem:[%s671_s19 + $0x18] sm:$0xff]  ;;  %v200_v15 = vld [vmem:[%s671_s19 + $0x10] sm:$0xff]  ;;  %v199_v16 = vld [vmem:[%s671_s19 + $0x8] sm:$0xff] }
  0x35   : > { %412 = vmatprep.subr.mxu0 %v585_v2  ;;  %v198_v17 = vld [vmem:[%s671_s19] sm:$0xff] }
  0x36   : > { %413 = vmatpush3.msra.mxu0 %v211_v4  ;;  %v197_v18 = vld [vmem:[#allocation2] sm:$0xff] }
  0x37   : > { %414 = vmatprep.subr.mxu0 %v585_v2 }
  0x38   : > { %415 = vmatpush3.msra.mxu0 %v210_v5 }
  0x39   : > { %416 = vmatprep.subr.mxu0 %v585_v2 }
  0x3a   : > { %417 = vmatpush3.msra.mxu0 %v209_v6 }
  0x3b   : > { %418 = vmatprep.subr.mxu0 %v585_v2 }
  0x3c   : > { %419 = vmatpush3.msra.mxu0 %v208_v7 }
  0x3d   : > { %420 = vmatprep.subr.mxu0 %v585_v2 }
  0x3e   : > { %421 = vmatpush3.msra.mxu0 %v207_v8 }
  0x3f   : > { %422 = vmatprep.subr.mxu0 %v585_v2 }
  0x40   : > { %423 = vmatpush3.msra.mxu0 %v206_v9 }
  0x41   : > { %424 = vmatprep.subr.mxu0 %v585_v2 }
  0x42   : > { %425 = vmatpush3.msra.mxu0 %v205_v10 }
  0x43   : > { %426 = vmatprep.subr.mxu0 %v585_v2 }
  0x44   : > { %427 = vmatpush3.msra.mxu0 %v204_v11 }
  0x45   : > { %428 = vmatprep.subr.mxu0 %v585_v2 }
  0x46   : > { %429 = vmatpush3.msra.mxu0 %v203_v12 }
  0x47   : > { %430 = vmatprep.subr.mxu0 %v585_v2 }
  0x48   : > { %431 = vmatpush3.msra.mxu0 %v202_v13 }
  0x49   : > { %432 = vmatprep.subr.mxu0 %v585_v2 }
  0x4a   : > { %433 = vmatpush3.msra.mxu0 %v201_v14 }
  0x4b   : > { %434 = vmatprep.subr.mxu0 %v585_v2 }
  0x4c   : > { %435 = vmatpush3.msra.mxu0 %v200_v15 }
  0x4d   : > { %436 = vmatprep.subr.mxu0 %v585_v2 }
  0x4e   : > { %437 = vmatpush3.msra.mxu0 %v199_v16 }
  0x4f   : > { %438 = vmatprep.subr.mxu0 %v585_v2 }
  0x50   : > { %439 = vmatpush3.msra.mxu0 %v198_v17 }
  0x51   : > { %441 = vmatmul.mubr.f32.vlgmr.msra.gmra.mxu0 %v197_v18 }
 0x10f   : > { %288 = sbr.rel (%p386_p7) target bundleno = 283 (0x11b), region = 40 }
 0x111   : > { %v280_v19 = vpop.f32.mrf.mxu0 }
 0x112   : > { %284 = vst [vmem:[#allocation2] sm:$0xff] %v280_v19 }
 0x113   : > { %v442_v20 = vpop.f32.mrf.mxu0 }
 0x119   : > { %v289_v21 = vld [vmem:[#allocation2] sm:$0xff] }
 0x11a   : > { %290 = vst [vmem:[%s721_s2] sm:$0xff] %v289_v21 }
 0x11b PF: > { %s15_s14 = sadd.s32 1, %s580_s14   ;;  %s725_s9 = smov %s564_s10 }
 0x11c   : > { %p12_p9 = scmp.ge.s32.totalorder %s15_s14, 5   ;;  %s726_s10 = smov %s568_s11 }
 0x11d   : > { %s727_s11 = smov %s651_s21  ;;  %s728_s12 = smov %s576_s13 }
 0x11e   : > { %s729_s13 = smov %s731_s16  ;;  %14 = sbr.rel (!%p12_p9) target bundleno = 4 (0x4), region = 79 }
 0x123   :  { %310 = vsyncpa [#allocation4], 1 }
 0x124   :  { %312 = vsyncpa [#allocation4 + $0x1], 1 }

</bundles_post_ra>
